<compile_context>
chip_gen: v5e
topology: v5e:2x2
jax: 0.10.0
libtpu: 0.0.40
codegen_flags: <defaults>
</compile_context>

<pallas_src>
import functools

import jax
import jax.numpy as jnp
from jax.experimental import pallas as pl
from jax.experimental.pallas import tpu as pltpu


LANE = 128      # TPU lane width: pad every feature dim to a multiple of this
BLOCK_BATCH = 128


def _round_up(n, m):
    return ((n + m - 1) // m) * m


# ----------------------------------------------------------------------------
# Fused kernel: one batch tile through the whole encoder+decoder stack.
#   in_refs  = x_tile, w0, b0, w1, b1, ..., w{L-1}, b{L-1}
#              (weights/biases VMEM-resident, constant block index across grid)
#   out_ref  = reconstruction tile (block_batch, out_pad)
# Each layer: z = h @ W' + b' (f32 accumulation), activation in f32, then cast
# back to the compute dtype for the next MXU pass.  BN already folded into W'.
# ----------------------------------------------------------------------------
def _fused_autoencoder_kernel(x_ref, *rest, activations):
    *wb_refs, o_ref = rest
    num_layers = len(activations)
    assert len(wb_refs) == 2 * num_layers

    h = x_ref[...]
    z = h.astype(jnp.float32)
    for i, act in enumerate(activations):           # static Python unroll
        w = wb_refs[2 * i][...]                     # (in_pad, out_pad), compute dtype
        b = wb_refs[2 * i + 1][...]                 # (1, out_pad), f32
        z = jnp.dot(h, w, preferred_element_type=jnp.float32) + b
        if act == "relu":
            z = jnp.maximum(z, 0.0)                 # VPU, f32
        elif act == "tanh":
            z = jnp.tanh(z)                         # EUP, f32
        elif act in (None, "linear"):
            pass
        else:
            raise ValueError(f"unsupported activation: {act}")
        if i + 1 < num_layers:
            h = z.astype(w.dtype)                   # back to compute dtype for next dot
    o_ref[...] = z.astype(o_ref.dtype)


def autoencoder_forward(params, x, *, block_batch=BLOCK_BATCH,
                        compute_dtype=jnp.float32):
    """Forward pass decoder(encoder(x)) as one fused, batch-tiled Pallas kernel."""
    activations = tuple(p["activation"] for p in params)
    kernel = functools.partial(_fused_autoencoder_kernel, activations=activations)

    batch, in_features = x.shape
    in_pad = params[0]["w_pad"].shape[0]
    out_features = params[-1]["w"].shape[1]
    out_pad = params[-1]["w_pad"].shape[1]

    # Lane-dense, sublane-dense input: zero-pad features to the padded layer
    # width and batch to a multiple of the batch tile.  Padded rows/lanes stay
    # exactly zero through every layer (zero weight rows/cols) and are sliced
    # off below.
    batch_pad = _round_up(batch, block_batch)
    x_pad = jnp.zeros((batch_pad, in_pad), compute_dtype)
    x_pad = x_pad.at[:batch, :in_features].set(x.astype(compute_dtype))

    flat_inputs = [x_pad]
    in_specs = [pl.BlockSpec((block_batch, in_pad), lambda i: (i, 0))]
    for p in params:
        w = p["w_pad"].astype(compute_dtype)        # (in_pad, out_pad)
        b = p["b_pad"]                              # (1, out_pad), f32 epilogue bias
        flat_inputs.append(w)
        flat_inputs.append(b)
        # Constant index_map -> weights stay VMEM-resident across batch tiles.
        in_specs.append(pl.BlockSpec(w.shape, lambda i: (0, 0)))
        in_specs.append(pl.BlockSpec(b.shape, lambda i: (0, 0)))

    out_specs = pl.BlockSpec((block_batch, out_pad), lambda i: (i, 0))
    grid = (batch_pad // block_batch,)

    # Advisory cost hint so XLA can schedule around this latency-dominated call.
    flops = 2 * batch_pad * sum(int(p["w_pad"].shape[0]) * int(p["w_pad"].shape[1])
                                for p in params)
    transcendentals = batch_pad * sum(int(p["w_pad"].shape[1]) for p in params
                                      if p["activation"] == "tanh")
    bytes_accessed = (sum(int(a.size) * a.dtype.itemsize for a in flat_inputs)
                      + batch_pad * out_pad * 4)
    cost = pl.CostEstimate(flops=flops, transcendentals=transcendentals,
                           bytes_accessed=bytes_accessed)

    # Explicit VMEM budget: resident weights/biases + double-buffered
    # input/output tiles + headroom (keeps v5e's 16 MiB scoped default and
    # v7x's 64 MiB physical VMEM both satisfied for realistic sizes).
    itemsize = jnp.dtype(compute_dtype).itemsize
    weight_bytes = sum(int(p["w_pad"].size) * itemsize + int(p["b_pad"].size) * 4
                       for p in params)
    tile_bytes = block_batch * in_pad * itemsize + block_batch * out_pad * 4
    vmem_limit = int(min(2 * weight_bytes + 4 * tile_bytes + (16 << 20), 100 << 20))

    y_pad = pl.pallas_call(
        kernel,
        out_shape=jax.ShapeDtypeStruct((batch_pad, out_pad), jnp.float32),
        grid=grid,
        in_specs=in_specs,
        out_specs=out_specs,
        compiler_params=pltpu.CompilerParams(
            dimension_semantics=("parallel",),   # shards batch tiles over v7x's 2 TCs
            vmem_limit_bytes=vmem_limit),
        cost_estimate=cost,
    )(*flat_inputs)

    return y_pad[:batch, :out_features]


# ----------------------------------------------------------------------------
# Parameter construction (deterministic, in-script), mirroring
# Autoencoder.__init__: encoder stacks forward, decoder reversed, last decoder
# layer has no BatchNorm/Dropout and uses final_activation.
# BN (eval) is folded into the Linear; folded params are zero-padded to
# multiples of 128 lanes for the kernel.
# ----------------------------------------------------------------------------
def _make_layer_params(key, in_f, out_f, batch_norm):
    k_w, k_b, k_g, k_beta, k_rm, k_rv = jax.random.split(key, 6)
    w = jax.random.normal(k_w, (in_f, out_f), jnp.float32) * (1.0 / jnp.sqrt(in_f))
    b = jax.random.normal(k_b, (out_f,), jnp.float32) * 0.1
    if batch_norm:
        eps = 1e-5
        gamma = 1.0 + 0.1 * jax.random.normal(k_g, (out_f,), jnp.float32)
        beta = 0.1 * jax.random.normal(k_beta, (out_f,), jnp.float32)
        running_mean = 0.1 * jax.random.normal(k_rm, (out_f,), jnp.float32)
        running_var = 1.0 + 0.1 * jnp.abs(jax.random.normal(k_rv, (out_f,), jnp.float32))
        scale = gamma / jnp.sqrt(running_var + eps)
        shift = beta - running_mean * scale
    else:
        scale = jnp.ones((out_f,), jnp.float32)
        shift = jnp.zeros((out_f,), jnp.float32)
    w_folded = w * scale[None, :]                  # fold eval-mode BN into Linear
    b_folded = b * scale + shift
    return dict(w=w, b=b, scale=scale, shift=shift,
                w_folded=w_folded, b_folded=b_folded)


def _pad_layer(p):
    in_f, out_f = p["w_folded"].shape
    in_pad, out_pad = _round_up(in_f, LANE), _round_up(out_f, LANE)
    w_pad = jnp.zeros((in_pad, out_pad), jnp.float32)
    w_pad = w_pad.at[:in_f, :out_f].set(p["w_folded"])
    b_pad = jnp.zeros((1, out_pad), jnp.float32)
    b_pad = b_pad.at[0, :out_f].set(p["b_folded"])
    p["w_pad"], p["b_pad"] = w_pad, b_pad
    return p


def build_autoencoder_params(key, layer_sizes, activation="relu",
                             final_activation="tanh"):
    num_stacks = len(layer_sizes) - 1
    layers = []
    keys = jax.random.split(key, 2 * num_stacks)
    ki = 0
    # encoder
    for l in range(num_stacks):
        p = _make_layer_params(keys[ki], layer_sizes[l], layer_sizes[l + 1],
                               batch_norm=True)
        p["activation"] = activation
        layers.append(_pad_layer(p))
        ki += 1
    # decoder
    for l in range(num_stacks, 0, -1):
        last = (l - 1 == 0)
        p = _make_layer_params(keys[ki], layer_sizes[l], layer_sizes[l - 1],
                               batch_norm=not last)
        p["activation"] = final_activation if last else activation
        layers.append(_pad_layer(p))
        ki += 1
    return layers


# Pure-JAX reference implementing the ORIGINAL (unfolded, unpadded) semantics:
# Linear -> BN(eval) -> activation -> Dropout(eval)=identity, per layer.
def _reference_forward(params, x):
    h = x
    for p in params:
        z = h @ p["w"] + p["b"]
        z = z * p["scale"] + p["shift"]
        if p["activation"] == "relu":
            z = jnp.maximum(z, 0.0)
        elif p["activation"] == "tanh":
            z = jnp.tanh(z)
        h = z
    return h


if __name__ == "__main__":
    key = jax.random.PRNGKey(0)
    k_params, k_x = jax.random.split(key)

    layer_sizes = [16, 32, 8]          # input -> ... -> latent
    batch = 256                        # two 128-row batch tiles -> exercises the grid
    params = build_autoencoder_params(k_params, layer_sizes)

    x = jax.random.normal(k_x, (batch, layer_sizes[0]), jnp.float32)
    y_ref = _reference_forward(params, x)

    # f32 path (reference-exact).
    y = jax.block_until_ready(autoencoder_forward(params, x))
    assert y.shape == (batch, layer_sizes[0]), y.shape
    assert jnp.allclose(y, y_ref, atol=1e-5, rtol=1e-5), "f32 mismatch vs reference"

    # bf16 storage/compute path (v6e/v7x MXU rate, half the VMEM/DMA bytes);
    # accumulation and the bias/activation epilogue stay f32 inside the kernel.
    y_bf16 = jax.block_until_ready(
        autoencoder_forward(params, x, compute_dtype=jnp.bfloat16))
    assert y_bf16.shape == (batch, layer_sizes[0]), y_bf16.shape
    assert jnp.allclose(y_bf16, y_ref, atol=5e-2, rtol=5e-2), "bf16 mismatch vs reference"

    print("KERNEL_OK")
</pallas_src>

<mosaic_0001>
module attributes {stable_mosaic.version = 11 : i64} {
  func.func @_fused_autoencoder_kernel(%arg0: i32, %arg1: memref<128x128xf32, #tpu.memory_space<vmem>>, %arg2: memref<128x128xf32, #tpu.memory_space<vmem>>, %arg3: memref<1x128xf32, #tpu.memory_space<vmem>>, %arg4: memref<128x128xf32, #tpu.memory_space<vmem>>, %arg5: memref<1x128xf32, #tpu.memory_space<vmem>>, %arg6: memref<128x128xf32, #tpu.memory_space<vmem>>, %arg7: memref<1x128xf32, #tpu.memory_space<vmem>>, %arg8: memref<128x128xf32, #tpu.memory_space<vmem>>, %arg9: memref<1x128xf32, #tpu.memory_space<vmem>>, %arg10: memref<128x128xf32, #tpu.memory_space<vmem>>) attributes {dimension_semantics = [#tpu.dimension_semantics<parallel>], iteration_bounds = array<i64: 2>, scalar_prefetch = 0 : i64, scratch_operands = 0 : i64, tpu.core_type = #tpu.core_type<tc>, window_params = [{transform_indices = @transform_0, window_bounds = array<i64: 128, 128>}, {pipeline_mode = #tpu.pipeline_mode<synchronous>, transform_indices = @transform_1, window_bounds = array<i64: 128, 128>}, {pipeline_mode = #tpu.pipeline_mode<synchronous>, transform_indices = @transform_2, window_bounds = array<i64: 1, 128>}, {pipeline_mode = #tpu.pipeline_mode<synchronous>, transform_indices = @transform_3, window_bounds = array<i64: 128, 128>}, {pipeline_mode = #tpu.pipeline_mode<synchronous>, transform_indices = @transform_4, window_bounds = array<i64: 1, 128>}, {pipeline_mode = #tpu.pipeline_mode<synchronous>, transform_indices = @transform_5, window_bounds = array<i64: 128, 128>}, {pipeline_mode = #tpu.pipeline_mode<synchronous>, transform_indices = @transform_6, window_bounds = array<i64: 1, 128>}, {pipeline_mode = #tpu.pipeline_mode<synchronous>, transform_indices = @transform_7, window_bounds = array<i64: 128, 128>}, {pipeline_mode = #tpu.pipeline_mode<synchronous>, transform_indices = @transform_8, window_bounds = array<i64: 1, 128>}, {transform_indices = @transform_9, window_bounds = array<i64: 128, 128>}]} {
    %c0 = arith.constant 0 : index
    %c0_0 = arith.constant 0 : index
    %0 = vector.load %arg1[%c0, %c0_0] : memref<128x128xf32, #tpu.memory_space<vmem>>, vector<128x128xf32>
    %c0_1 = arith.constant 0 : index
    %c0_2 = arith.constant 0 : index
    %1 = vector.load %arg2[%c0_1, %c0_2] : memref<128x128xf32, #tpu.memory_space<vmem>>, vector<128x128xf32>
    %c0_3 = arith.constant 0 : index
    %c0_4 = arith.constant 0 : index
    %2 = vector.load %arg3[%c0_3, %c0_4] : memref<1x128xf32, #tpu.memory_space<vmem>>, vector<1x128xf32>
    %cst = arith.constant dense<0.000000e+00> : vector<128x128xf32>
    %3 = tpu.matmul %0, %1, %cst {dimension_numbers = #tpu.dot_dimension_numbers<[1], [0], [0], [1], [0, 0, 1, 1], [], []>} : vector<128x128xf32>, vector<128x128xf32>, vector<128x128xf32> -> vector<128x128xf32>
    %4 = vector.broadcast %2 : vector<1x128xf32> to vector<128x128xf32>
    %5 = arith.addf %3, %4 : vector<128x128xf32>
    %cst_5 = arith.constant 0.000000e+00 : f32
    %6 = vector.broadcast %cst_5 : f32 to vector<128x128xf32>
    %7 = arith.maximumf %5, %6 : vector<128x128xf32>
    %c0_6 = arith.constant 0 : index
    %c0_7 = arith.constant 0 : index
    %8 = vector.load %arg4[%c0_6, %c0_7] : memref<128x128xf32, #tpu.memory_space<vmem>>, vector<128x128xf32>
    %c0_8 = arith.constant 0 : index
    %c0_9 = arith.constant 0 : index
    %9 = vector.load %arg5[%c0_8, %c0_9] : memref<1x128xf32, #tpu.memory_space<vmem>>, vector<1x128xf32>
    %cst_10 = arith.constant dense<0.000000e+00> : vector<128x128xf32>
    %10 = tpu.matmul %7, %8, %cst_10 {dimension_numbers = #tpu.dot_dimension_numbers<[1], [0], [0], [1], [0, 0, 1, 1], [], []>} : vector<128x128xf32>, vector<128x128xf32>, vector<128x128xf32> -> vector<128x128xf32>
    %11 = vector.broadcast %9 : vector<1x128xf32> to vector<128x128xf32>
    %12 = arith.addf %10, %11 : vector<128x128xf32>
    %cst_11 = arith.constant 0.000000e+00 : f32
    %13 = vector.broadcast %cst_11 : f32 to vector<128x128xf32>
    %14 = arith.maximumf %12, %13 : vector<128x128xf32>
    %c0_12 = arith.constant 0 : index
    %c0_13 = arith.constant 0 : index
    %15 = vector.load %arg6[%c0_12, %c0_13] : memref<128x128xf32, #tpu.memory_space<vmem>>, vector<128x128xf32>
    %c0_14 = arith.constant 0 : index
    %c0_15 = arith.constant 0 : index
    %16 = vector.load %arg7[%c0_14, %c0_15] : memref<1x128xf32, #tpu.memory_space<vmem>>, vector<1x128xf32>
    %cst_16 = arith.constant dense<0.000000e+00> : vector<128x128xf32>
    %17 = tpu.matmul %14, %15, %cst_16 {dimension_numbers = #tpu.dot_dimension_numbers<[1], [0], [0], [1], [0, 0, 1, 1], [], []>} : vector<128x128xf32>, vector<128x128xf32>, vector<128x128xf32> -> vector<128x128xf32>
    %18 = vector.broadcast %16 : vector<1x128xf32> to vector<128x128xf32>
    %19 = arith.addf %17, %18 : vector<128x128xf32>
    %cst_17 = arith.constant 0.000000e+00 : f32
    %20 = vector.broadcast %cst_17 : f32 to vector<128x128xf32>
    %21 = arith.maximumf %19, %20 : vector<128x128xf32>
    %c0_18 = arith.constant 0 : index
    %c0_19 = arith.constant 0 : index
    %22 = vector.load %arg8[%c0_18, %c0_19] : memref<128x128xf32, #tpu.memory_space<vmem>>, vector<128x128xf32>
    %c0_20 = arith.constant 0 : index
    %c0_21 = arith.constant 0 : index
    %23 = vector.load %arg9[%c0_20, %c0_21] : memref<1x128xf32, #tpu.memory_space<vmem>>, vector<1x128xf32>
    %cst_22 = arith.constant dense<0.000000e+00> : vector<128x128xf32>
    %24 = tpu.matmul %21, %22, %cst_22 {dimension_numbers = #tpu.dot_dimension_numbers<[1], [0], [0], [1], [0, 0, 1, 1], [], []>} : vector<128x128xf32>, vector<128x128xf32>, vector<128x128xf32> -> vector<128x128xf32>
    %25 = vector.broadcast %23 : vector<1x128xf32> to vector<128x128xf32>
    %26 = arith.addf %24, %25 : vector<128x128xf32>
    %27 = math.tanh %26 : vector<128x128xf32>
    %c0_23 = arith.constant 0 : index
    %c0_24 = arith.constant 0 : index
    %28 = vector.load %arg10[%c0_23, %c0_24] : memref<128x128xf32, #tpu.memory_space<vmem>>, vector<128x128xf32>
    tpu.vector_store %arg10[%c0_23, %c0_24], %27 {strides = array<i32>} : memref<128x128xf32, #tpu.memory_space<vmem>>, vector<128x128xf32>,
    return
  }
  func.func @transform_0(%arg0: i32) -> (i32, i32) {
    %c0_i32 = arith.constant 0 : i32
    %c0_i32_0 = arith.constant 0 : i32
    return %arg0, %c0_i32 : i32, i32
  }
  func.func @transform_1(%arg0: i32) -> (i32, i32) {
    %c0_i32 = arith.constant 0 : i32
    %c0_i32_0 = arith.constant 0 : i32
    %c0_i32_1 = arith.constant 0 : i32
    return %c0_i32, %c0_i32_0 : i32, i32
  }
  func.func @transform_2(%arg0: i32) -> (i32, i32) {
    %c0_i32 = arith.constant 0 : i32
    %c0_i32_0 = arith.constant 0 : i32
    %c0_i32_1 = arith.constant 0 : i32
    return %c0_i32, %c0_i32_0 : i32, i32
  }
  func.func @transform_3(%arg0: i32) -> (i32, i32) {
    %c0_i32 = arith.constant 0 : i32
    %c0_i32_0 = arith.constant 0 : i32
    %c0_i32_1 = arith.constant 0 : i32
    return %c0_i32, %c0_i32_0 : i32, i32
  }
  func.func @transform_4(%arg0: i32) -> (i32, i32) {
    %c0_i32 = arith.constant 0 : i32
    %c0_i32_0 = arith.constant 0 : i32
    %c0_i32_1 = arith.constant 0 : i32
    return %c0_i32, %c0_i32_0 : i32, i32
  }
  func.func @transform_5(%arg0: i32) -> (i32, i32) {
    %c0_i32 = arith.constant 0 : i32
    %c0_i32_0 = arith.constant 0 : i32
    %c0_i32_1 = arith.constant 0 : i32
    return %c0_i32, %c0_i32_0 : i32, i32
  }
  func.func @transform_6(%arg0: i32) -> (i32, i32) {
    %c0_i32 = arith.constant 0 : i32
    %c0_i32_0 = arith.constant 0 : i32
    %c0_i32_1 = arith.constant 0 : i32
    return %c0_i32, %c0_i32_0 : i32, i32
  }
  func.func @transform_7(%arg0: i32) -> (i32, i32) {
    %c0_i32 = arith.constant 0 : i32
    %c0_i32_0 = arith.constant 0 : i32
    %c0_i32_1 = arith.constant 0 : i32
    return %c0_i32, %c0_i32_0 : i32, i32
  }
  func.func @transform_8(%arg0: i32) -> (i32, i32) {
    %c0_i32 = arith.constant 0 : i32
    %c0_i32_0 = arith.constant 0 : i32
    %c0_i32_1 = arith.constant 0 : i32
    return %c0_i32, %c0_i32_0 : i32, i32
  }
  func.func @transform_9(%arg0: i32) -> (i32, i32) {
    %c0_i32 = arith.constant 0 : i32
    %c0_i32_0 = arith.constant 0 : i32
    return %arg0, %c0_i32 : i32, i32
  }
}

</mosaic_0001>

<bundles_post_ra>
// kernel: tpu_custom_call.1
= control target key start
LH: loop header
LB: loop body
LE: loop exit
PB: predicated region body
PF: predicated region fallthrough
CT: control target
= control target key end

     0   :  { %s1704_s0 = inlined_call_operand.hbm [shape: f32[256,128], index: 0, kind: input, shape index: {}]   ;;  %s1705_s1 = inlined_call_operand.hbm [shape: f32[128,128], index: 1, kind: input, shape index: {}]   ;;  %s1706_s2 = inlined_call_operand.vmem [shape: f32[1,128], index: 2, kind: input, shape index: {}]   ;;  %s1707_s3 = inlined_call_operand.hbm [shape: f32[128,128], index: 3, kind: input, shape index: {}]   ;;  %s1708_s4 = inlined_call_operand.vmem [shape: f32[1,128], index: 4, kind: input, shape index: {}]   ;;  %s1709_s5 = inlined_call_operand.hbm [shape: f32[128,128], index: 5, kind: input, shape index: {}]   ;;  %s1710_s6 = inlined_call_operand.vmem [shape: f32[1,128], index: 6, kind: input, shape index: {}]   ;;  %s1711_s7 = inlined_call_operand.hbm [shape: f32[128,128], index: 7, kind: input, shape index: {}]   ;;  %s1712_s8 = inlined_call_operand.vmem [shape: f32[1,128], index: 8, kind: input, shape index: {}]   ;;  %s1713_s9 = inlined_call_operand.hbm [shape: f32[256,128], index: 9, kind: output, shape index: {}]  }
   0x1   :  { %1716 = sst [smem:[#allocation16_spill]] %s1705_s1 }
   0x2   :  { %1717 = sst [smem:[#allocation17_spill]] %s1707_s3 }
   0x3   :  { %1718 = sst [smem:[#allocation18_spill]] %s1709_s5 }
   0x4   :  { %14 = vsyncpa [#allocation3], 0 }
   0x5   :  { %16 = vsyncpa [#allocation3 + $0x1], 0 }
   0x6   :  { %17 = vsyncpa [#allocation6], 0 }
   0x7   :  { %18 = vsyncpa [#allocation9], 0 }
   0x8   :  { %19 = vsyncpa [#allocation4], 0 }
   0x9   :  { %21 = vsyncpa [#allocation4 + $0x1], 0  ;;  %s1419_s30 = smov 0   ;;  %s1421_s10 = smov 0  }
   0xa   :  { %s1423_s11 = smov 0   ;;  %s1425_s12 = smov 0  }
   0xb LB: > { %s1440_s13 = sadd.s32 4294967295, %s1359_s12   ;;  %s984_s14 = sadd.s32 4294967294, %s1359_s12   ;;  %s1359_s12 = sphi %s1425_s12, %s1734_s12   ;;  %s1355_s11 = sphi %s1423_s11, %s1733_s11   ;;  %s1351_s10 = sphi %s1421_s10, %s1732_s10   ;;  %s1347_s30 = sphi %s1419_s30, %s1731_s30  }
   0xc   : > { %p47_p0 = scmp.ne.s32.totalorder %s1351_s10, %s1347_s30  ;;  %p48_p1 = scmp.eq.s32.totalorder %s1440_s13, 0 }
   0xd   : > { %p239_p2 = scmp.eq.s32.totalorder %s1440_s13, 1  ;;  %p245_p3 = scmp.eq.s32.totalorder %s984_s14, 1 }
   0xe   : > { %p1449_p4 = por %p48_p1, %p47_p0  ;;  %p985_p5 = scmp.ge.s32.totalorder %s1359_s12, 1 }
   0xf   : > { %p1454_p6 = por %p245_p3, %p47_p0  ;;  %p252_p7 = scmp.lt.s32.totalorder %s1359_s12, 3 }
  0x10   : > { %s1721_s1 = sld [smem:[#allocation16_spill]]  ;;  %s1361_s21 = smov [#allocation5]  }
  0x11   : > { %p1462_p8 = pnand %p985_p5, %p252_p7  ;;  %s265_s22 = sshll.u32 %s1361_s21, 4  ;;  %s266_s22 = int_to_ptr.vmem [resolvable:$true] %s265_s22 }
  0x12   : > { %s1724_s5 = sld [smem:[#allocation18_spill]]  ;;  %s1714_s27 = smov 128  }
  0x13   : > { %p1028_p9 = pneg %p1462_p8  ;;  %s1715_s28 = smov 8  }
  0x14   : > { %s1364_s29 = smov [#allocation8]   ;;  %s1725_s3 = sld [smem:[#allocation17_spill]] }
  0x15   : > { %p1470_p10 = pnand %p1028_p9, %p48_p1  ;;  %s299_s14 = sshll.u32 %s1364_s29, 4  ;;  %s300_s14 = int_to_ptr.vmem [resolvable:$true] %s299_s14 }
  0x16   : > { %s263_s19 = sshll.u32 %s1721_s1, 4  ;;  %s314_s24 = sshll.u32 %s1711_s7, 4  ;;  %s264_s19 = int_to_ptr.hbm [resolvable:$true] %s263_s19  ;;  %s315_s24 = int_to_ptr.hbm [resolvable:$true] %s314_s24 }
  0x17   : > { %1031 = dma.hbm_to_vmem [thread:$0]  (!%p1470_p10), %s264_s19, 2048, %s266_s22, [#allocation6], %s1714_s27, %s1714_s27, %s1715_s28  }
  0x18   : > { %s297_s26 = sshll.u32 %s1724_s5, 4  ;;  %s1365_s25 = smov [#allocation7]   ;;  %s298_s26 = int_to_ptr.hbm [resolvable:$true] %s297_s26 }
  0x19   : > { %1037 = dma.hbm_to_vmem [thread:$0]  (!%p1470_p10), %s298_s26, 2048, %s300_s14, [#allocation9], %s1714_s27, %s1714_s27, %s1715_s28  }
  0x1a   : > { %s280_s21 = sshll.u32 %s1725_s3, 4  ;;  %s282_s29 = sshll.u32 %s1365_s25, 4  ;;  %s281_s21 = int_to_ptr.hbm [resolvable:$true] %s280_s21  ;;  %s283_s29 = int_to_ptr.vmem [resolvable:$true] %s282_s29 }
  0x1b   : > { %1034 = dma.hbm_to_vmem [thread:$0]  (!%p1470_p10), %s281_s21, 2048, %s283_s29, [#allocation6], %s1714_s27, %s1714_s27, %s1715_s28  }
  0x1c   : > { %s1366_s17 = smov [#allocation10]   ;;  %s1505_s14 = sadd.s32 1, %s1359_s12  }
  0x1d   : > { %s316_s26 = sshll.u32 %s1366_s17, 4  ;;  %s34_s18 = sadd.s32 1, %s1355_s11  ;;  %s317_s26 = int_to_ptr.vmem [resolvable:$true] %s316_s26 }
  0x1e   : > { %1040 = dma.hbm_to_vmem [thread:$0]  (!%p1470_p10), %s315_s24, 2048, %s317_s26, [#allocation9], %s1714_s27, %s1714_s27, %s1715_s28  }
  0x1f   : > { %s31_s19 = ssub.s32 %s1359_s12, %s1505_s14  ;;  %p41_p12 = scmp.ne.s32.totalorder %s1355_s11, %s1351_s10 }
  0x20   : > { %p32_p13 = scmp.eq.s32.totalorder %s31_s19, 0  ;;  %p42_p0 = scmp.eq.s32.totalorder %s1359_s12, 0 }
  0x21   : > { %p1515_p3 = por %p239_p2, %p41_p12  ;;  %p1053_p5 = scmp.lt.s32.totalorder %s1359_s12, 2 }
  0x22   : > { %s1521_s22 = scalar_select %p32_p13, %s1355_s11, %s34_s18  }
  0x23   : > { %p43_p7 = por %p42_p0, %p41_p12  ;;  %s333_s23 = sand.u32 1, %s1355_s11  }
  0x24   : > { %s991_s25 = sshll.u32 %s333_s23, 7  ;;  %s1006_s24 = sshll.u32 %s1359_s12, 7 }
  0x25   : > { %s342_s26 = scalar_lea.hbm %s1704_s0, %s1006_s24  ;;  %s337_s27 = scalar_lea.vmem [#allocation2], %s991_s25 }
  0x26   : > { %s345_s28 = sshll.u32 %s337_s27, 4  ;;  %s343_s19 = sshll.u32 %s342_s26, 4  ;;  %s346_s28 = int_to_ptr.vmem [resolvable:$true] %s345_s28  ;;  %s344_s19 = int_to_ptr.hbm [resolvable:$true] %s343_s19 }
  0x27   : > { %p1528_p2 = pnand %p1053_p5, %p43_p7  ;;  %s334_s18 = scalar_lea.sflag [#allocation3], %s333_s23 }
  0x28   : > { %s1255_s3 = sshra.s32 %s344_s19, 4  ;;  %s1262_s27 = scalar_lea.hbm %s1704_s0, 256  ;;  %s1256_s3 = int_to_ptr.hbm [resolvable:$true] %s1255_s3 }
  0x29   : > { %s1257_s5 = scalar_lea.hbm %s1256_s3, 128  ;;  %p1259_p10 = pneg %p1528_p2 }
  0x2a   : > { %p1258_p9 = scmp.ne.s32.totalorder %s1256_s3, %s1257_s5  ;;  %p1263_p0 = scmp.lt.s32.totalorder %s1256_s3, %s1704_s0 }
  0x2b   : > { %p1264_p5 = scmp.lt.s32.totalorder %s1262_s27, %s1257_s5 }
  0x2c   : > { %p1260_p12 = pnand %p1259_p10, %p1258_p9 }
  0x2d   : > { %p1265_p7 = por %p1264_p5, %p1263_p0 }
  0x2e   : > { %p1261_p13 = pneg %p1260_p12 }
  0x30   : > { %p1266_p11 = pnand %p1265_p7, %p1261_p13 }
  0x32   : > { %1269 = shalt.err (!%p1266_p11)
}
  0x33   : > { %s1728_s23 = smov 8   ;;  %s1729_s26 = smov 128  }
  0x34   : > { %1044 = dma.hbm_to_vmem [thread:$0]  (!%p1528_p2), %s344_s19, 2048, %s346_s28, %s334_s18, %s1729_s26, %s1729_s26, %s1728_s23  }
  0x35   : > { %357 = sbr.rel (%p1462_p8) target bundleno = 756 (0x2f4), region = 56  ;;  %s1548_s24 = sand.u32 (!%p1462_p8), 1, %s1351_s10  }
  0x36   : > { %s995_s3 = sshll.u32 (!%p1462_p8), %s1548_s24, 7  ;;  %s360_s5 = scalar_lea.sflag (!%p1462_p8), [#allocation3], %s1548_s24 }
  0x37   : > { %s1554_s25 = scalar_lea.vmem (!%p1462_p8), [#allocation2], %s995_s3 }
  0x3a   : > { %1330 = dma.done.wait (%p1449_p4), %s360_s5, 2048  }
  0x3b   : > { %1332 = vsyncadd (%p1449_p4), %s360_s5, 4294965248 }
  0x3c   : > { %1334 = dma.done.wait (%p48_p1), [#allocation6], 4096  }
  0x3d   : > { %1336 = vsyncadd (%p48_p1), [#allocation6], 4294963200 }
  0x3e   : > { %1338 = dma.done.wait (%p48_p1), [#allocation9], 4096  }
  0x3f   : > { %1340 = vsyncadd (%p48_p1), [#allocation9], 4294963200  ;;  %v452_v0 = vld [vmem:[#allocation5 + $0x78] sm:$0xff]  ;;  %v451_v1 = vld [vmem:[#allocation5 + $0x70] sm:$0xff]  ;;  %s1638_s17 = scalar_lea.vmem [#allocation11], %s995_s3  ;;  %s1007_s23 = sshll.u32 %s1440_s13, 7 }
  0x40   : > { %457 = vmatpush.msra.mxu0 %v452_v0  ;;  %v450_v2 = vld [vmem:[#allocation5 + $0x68] sm:$0xff]  ;;  %v449_v3 = vld [vmem:[#allocation5 + $0x60] sm:$0xff]  ;;  %v448_v4 = vld [vmem:[#allocation5 + $0x58] sm:$0xff]  ;;  %s869_s5 = scalar_lea.hbm %s1713_s9, %s1007_s23  ;;  %s858_s15 = scalar_lea.sflag [#allocation4], %s1548_s24 }
  0x41   : > { %v447_v5 = vld [vmem:[#allocation5 + $0x50] sm:$0xff]  ;;  %v446_v6 = vld [vmem:[#allocation5 + $0x48] sm:$0xff]  ;;  %v445_v7 = vld [vmem:[#allocation5 + $0x40] sm:$0xff]  ;;  %s872_s1 = sshll.u32 %s869_s5, 4  ;;  %s1305_s18 = scalar_lea.hbm %s1713_s9, 256  ;;  %s873_s1 = int_to_ptr.hbm [resolvable:$true] %s872_s1 }
  0x42   : > { %458 = vmatpush.msra.mxu0 %v451_v1  ;;  %v444_v8 = vld [vmem:[#allocation5 + $0x38] sm:$0xff]  ;;  %v443_v9 = vld [vmem:[#allocation5 + $0x30] sm:$0xff]  ;;  %v442_v10 = vld [vmem:[#allocation5 + $0x28] sm:$0xff]  ;;  %s1299_s20 = sshra.s32 %s873_s1, 4  ;;  %s1300_s20 = int_to_ptr.hbm [resolvable:$true] %s1299_s20 }
  0x43   : > { %v441_v11 = vld [vmem:[#allocation5 + $0x20] sm:$0xff]  ;;  %v440_v12 = vld [vmem:[#allocation5 + $0x18] sm:$0xff]  ;;  %v439_v13 = vld [vmem:[#allocation5 + $0x10] sm:$0xff]  ;;  %s1301_s13 = scalar_lea.hbm %s1300_s20, 128  ;;  %p1306_p11 = scmp.lt.s32.totalorder %s1300_s20, %s1713_s9 }
  0x44   : > { %459 = vmatpush.msra.mxu0 %v450_v2  ;;  %v438_v14 = vld [vmem:[#allocation5 + $0x8] sm:$0xff]  ;;  %v437_v15 = vld [vmem:[#allocation5] sm:$0xff]  ;;  %v423_v18 = vld [vmem:[%s1554_s25 + $0x10] sm:$0xff]  ;;  %p1302_p1 = scmp.ne.s32.totalorder %s1300_s20, %s1301_s13  ;;  %p1307_p2 = scmp.lt.s32.totalorder %s1305_s18, %s1301_s13 }
  0x45   : > { %v421_v16 = vld [vmem:[%s1554_s25] sm:$0xff]  ;;  %v422_v17 = vld [vmem:[%s1554_s25 + $0x8] sm:$0xff]  ;;  %v424_v19 = vld [vmem:[%s1554_s25 + $0x18] sm:$0xff] }
  0x46   : > { %460 = vmatpush.msra.mxu0 %v449_v3  ;;  %v425_v20 = vld [vmem:[%s1554_s25 + $0x20] sm:$0xff]  ;;  %v426_v21 = vld [vmem:[%s1554_s25 + $0x28] sm:$0xff]  ;;  %v427_v22 = vld [vmem:[%s1554_s25 + $0x30] sm:$0xff]  ;;  %p1303_p4 = pnand %p1302_p1, %p1515_p3  ;;  %p1308_p9 = por %p1307_p2, %p1306_p11 }
  0x47   : > { %v428_v23 = vld [vmem:[%s1554_s25 + $0x38] sm:$0xff]  ;;  %v429_v24 = vld [vmem:[%s1554_s25 + $0x40] sm:$0xff]  ;;  %v552_v26 = vld [vmem:[#allocation7 + $0x70] sm:$0xff] }
  0x48   : > { %461 = vmatpush.msra.mxu0 %v448_v4  ;;  %v553_v25 = vld [vmem:[#allocation7 + $0x78] sm:$0xff]  ;;  %v551_v27 = vld [vmem:[#allocation7 + $0x68] sm:$0xff]  ;;  %v550_v29 = vld [vmem:[#allocation7 + $0x60] sm:$0xff]  ;;  %p1304_p8 = pneg %p1303_p4 }
  0x49   : > { %558 = vmatpush.msra.mxu1 %v553_v25  ;;  %v430_v28 = vld [vmem:[%s1554_s25 + $0x48] sm:$0xff]  ;;  %v549_v30 = vld [vmem:[#allocation7 + $0x58] sm:$0xff]  ;;  %v548_v31 = vld [vmem:[#allocation7 + $0x50] sm:$0xff] }
  0x4a   : > { %462 = vmatpush.msra.mxu0 %v447_v5  ;;  %v547_v32 = vld [vmem:[#allocation7 + $0x48] sm:$0xff]  ;;  %v431_v33 = vld [vmem:[%s1554_s25 + $0x50] sm:$0xff]  ;;  %v546_v34 = vld [vmem:[#allocation7 + $0x40] sm:$0xff]  ;;  %p1309_p10 = pnand %p1308_p9, %p1304_p8 }
  0x4b   : > { %559 = vmatpush.msra.mxu1 %v552_v26  ;;  %v545_v35 = vld [vmem:[#allocation7 + $0x38] sm:$0xff]  ;;  %v544_v36 = vld [vmem:[#allocation7 + $0x30] sm:$0xff]  ;;  %v543_v37 = vld [vmem:[#allocation7 + $0x28] sm:$0xff] }
  0x4c   : > { %463 = vmatpush.msra.mxu0 %v446_v6  ;;  %v432_v38 = vld [vmem:[%s1554_s25 + $0x58] sm:$0xff]  ;;  %v542_v39 = vld [vmem:[#allocation7 + $0x20] sm:$0xff]  ;;  %v540_v41 = vld [vmem:[#allocation7 + $0x10] sm:$0xff] }
  0x4d   : > { %560 = vmatpush.msra.mxu1 %v551_v27  ;;  %v541_v40 = vld [vmem:[#allocation7 + $0x18] sm:$0xff]  ;;  %v433_v42 = vld [vmem:[%s1554_s25 + $0x60] sm:$0xff]  ;;  %v539_v43 = vld [vmem:[#allocation7 + $0x8] sm:$0xff] }
  0x4e   : > { %464 = vmatpush.msra.mxu0 %v445_v7  ;;  %v538_v44 = vld [vmem:[#allocation7] sm:$0xff]  ;;  %v434_v45 = vld [vmem:[%s1554_s25 + $0x68] sm:$0xff]  ;;  %v435_v46 = vld [vmem:[%s1554_s25 + $0x70] sm:$0xff] }
  0x4f   : > { %561 = vmatpush.msra.mxu1 %v550_v29  ;;  %v436_v47 = vld [vmem:[%s1554_s25 + $0x78] sm:$0xff]  ;;  %v1587_v48 = vld [vmem:[%s1706_s2] ss:$0 sm:$0xff]  ;;  %v645_v29 = vld [vmem:[#allocation8 + $0x30] sm:$0xff]  ;;  %s870_s25 = sshll.u32 %s1638_s17, 4  ;;  %s871_s25 = int_to_ptr.vmem [resolvable:$true] %s870_s25 }
  0x50   : > { %465 = vmatpush.msra.mxu0 %v444_v8  ;;  %v647_v25 = vld [vmem:[#allocation8 + $0x40] sm:$0xff]  ;;  %v646_v26 = vld [vmem:[#allocation8 + $0x38] sm:$0xff] }
  0x51   : > { %562 = vmatpush.msra.mxu1 %v549_v30 }
  0x52   : > { %466 = vmatpush.msra.mxu0 %v443_v9 }
  0x53   : > { %563 = vmatpush.msra.mxu1 %v548_v31  ;;  %v644_v31 = vld [vmem:[#allocation8 + $0x28] sm:$0xff] }
  0x54   : > { %467 = vmatpush.msra.mxu0 %v442_v10 }
  0x55   : > { %564 = vmatpush.msra.mxu1 %v547_v32  ;;  %v643_v32 = vld [vmem:[#allocation8 + $0x20] sm:$0xff] }
  0x56   : > { %468 = vmatpush.msra.mxu0 %v441_v11 }
  0x57   : > { %565 = vmatpush.msra.mxu1 %v546_v34 }
  0x58   : > { %469 = vmatpush.msra.mxu0 %v440_v12  ;;  %v654_v12 = vld [vmem:[#allocation8 + $0x78] sm:$0xff] }
  0x59   : > { %566 = vmatpush.msra.mxu1 %v545_v35  ;;  %659 = vmatpush.msra.mxu2 %v654_v12 }
  0x5a   : > { %470 = vmatpush.msra.mxu0 %v439_v13 }
  0x5b   : > { %567 = vmatpush.msra.mxu1 %v544_v36  ;;  %v641_v36 = vld [vmem:[#allocation8 + $0x10] sm:$0xff] }
  0x5c   : > { %471 = vmatpush.msra.mxu0 %v438_v14 }
  0x5d   : > { %568 = vmatpush.msra.mxu1 %v543_v37 }
  0x5e   : > { %472 = vmatpush.msra.mxu0 %v437_v15  ;;  %v653_v15 = vld [vmem:[#allocation8 + $0x70] sm:$0xff] }
  0x5f   : > { %473 = vmatmul.f32.vlgmr.msra.gmra.mxu0 %v421_v16  ;;  %569 = vmatpush.msra.mxu1 %v542_v39  ;;  %v639_v39 = vld [vmem:[#allocation8] sm:$0xff] }
  0x60   : > { %660 = vmatpush.msra.mxu2 %v653_v15 }
  0x61   : > { %570 = vmatpush.msra.mxu1 %v541_v40 }
  0x63   : > { %571 = vmatpush.msra.mxu1 %v540_v41 }
  0x65   : > { %572 = vmatpush.msra.mxu1 %v539_v43 }
  0x67   : > { %476 = vmatmul.f32.gmra.mxu0 %v422_v17  ;;  %573 = vmatpush.msra.mxu1 %v538_v44  ;;  %v652_v17 = vld [vmem:[#allocation8 + $0x68] sm:$0xff] }
  0x68   : > { %661 = vmatpush.msra.mxu2 %v652_v17  ;;  %v754_v17 = vld [vmem:[#allocation10 + $0x70] sm:$0xff] }
  0x6f   : > { %479 = vmatmul.f32.gmra.mxu0 %v423_v18  ;;  %v651_v18 = vld [vmem:[#allocation8 + $0x60] sm:$0xff] }
  0x70   : > { %662 = vmatpush.msra.mxu2 %v651_v18 }
  0x77   : > { %482 = vmatmul.f32.gmra.mxu0 %v424_v19  ;;  %v650_v19 = vld [vmem:[#allocation8 + $0x58] sm:$0xff] }
  0x78   : > { %663 = vmatpush.msra.mxu2 %v650_v19 }
  0x7f   : > { %485 = vmatmul.f32.gmra.mxu0 %v425_v20 }
  0x87   : > { %488 = vmatmul.f32.gmra.mxu0 %v426_v21 }
  0x8f   : > { %491 = vmatmul.f32.gmra.mxu0 %v427_v22  ;;  %v649_v22 = vld [vmem:[#allocation8 + $0x50] sm:$0xff] }
  0x90   : > { %664 = vmatpush.msra.mxu2 %v649_v22  ;;  %v752_v22 = vld [vmem:[#allocation10 + $0x60] sm:$0xff] }
  0x97   : > { %494 = vmatmul.f32.gmra.mxu0 %v428_v23 }
  0x9f   : > { %497 = vmatmul.f32.gmra.mxu0 %v429_v24  ;;  %v648_v24 = vld [vmem:[#allocation8 + $0x48] sm:$0xff] }
  0xa0   : > { %665 = vmatpush.msra.mxu2 %v648_v24  ;;  %v750_v24 = vld [vmem:[#allocation10 + $0x50] sm:$0xff] }
  0xa2   : > { %666 = vmatpush.msra.mxu2 %v647_v25 }
  0xa4   : > { %667 = vmatpush.msra.mxu2 %v646_v26 }
  0xa6   : > { %668 = vmatpush.msra.mxu2 %v645_v29  ;;  %v748_v29 = vld [vmem:[#allocation10 + $0x40] sm:$0xff] }
  0xa7   : > { %500 = vmatmul.f32.gmra.mxu0 %v430_v28 }
  0xa8   : > { %669 = vmatpush.msra.mxu2 %v644_v31  ;;  %v746_v31 = vld [vmem:[#allocation10 + $0x30] sm:$0xff] }
  0xaa   : > { %670 = vmatpush.msra.mxu2 %v643_v32  ;;  %v745_v32 = vld [vmem:[#allocation10 + $0x28] sm:$0xff] }
  0xaf   : > { %503 = vmatmul.f32.gmra.mxu0 %v431_v33  ;;  %v642_v33 = vld [vmem:[#allocation8 + $0x18] sm:$0xff] }
  0xb0   : > { %671 = vmatpush.msra.mxu2 %v642_v33 }
  0xb2   : > { %672 = vmatpush.msra.mxu2 %v641_v36 }
  0xb7   : > { %506 = vmatmul.f32.gmra.mxu0 %v432_v38  ;;  %v640_v38 = vld [vmem:[#allocation8 + $0x8] sm:$0xff] }
  0xb8   : > { %673 = vmatpush.msra.mxu2 %v640_v38  ;;  %v742_v38 = vld [vmem:[#allocation10 + $0x10] sm:$0xff] }
  0xba   : > { %674 = vmatpush.msra.mxu2 %v639_v39 }
  0xbf   : > { %509 = vmatmul.f32.gmra.mxu0 %v433_v42 }
  0xc7   : > { %512 = vmatmul.f32.gmra.mxu0 %v434_v45 }
  0xcf   : > { %515 = vmatmul.f32.gmra.mxu0 %v435_v46 }
  0xd7   : > { %518 = vmatmul.f32.gmra.mxu0 %v436_v47 }
  0xdc   : > { %v474_v49 = vpop.f32.mrf.mxu0 }
  0xdd   : > { %v475_v50 = vadd.f32 %v1587_v48, %v474_v49 }
  0xdf   : > { %v522_v51 = vmax.f32 %v475_v50, 0.0  ;;  %v1608_v50 = vld [vmem:[%s1708_s4] ss:$0 sm:$0xff] }
  0xe1   : > { %574 = vmatmul.f32.vlgmr.msra.gmra.mxu1 %v522_v51 }
  0xe4   : > { %v477_v52 = vpop.f32.mrf.mxu0 }
  0xe5   : > { %v478_v53 = vadd.f32 %v1587_v48, %v477_v52 }
  0xe7   : > { %v523_v54 = vmax.f32 %v478_v53, 0.0 }
  0xe9   : > { %577 = vmatmul.f32.gmra.mxu1 %v523_v54 }
  0xec   : > { %v480_v55 = vpop.f32.mrf.mxu0 }
  0xed   : > { %v481_v56 = vadd.f32 %v1587_v48, %v480_v55 }
  0xef   : > { %v524_v57 = vmax.f32 %v481_v56, 0.0 }
  0xf1   : > { %580 = vmatmul.f32.gmra.mxu1 %v524_v57 }
  0xf4   : > { %v483_v58 = vpop.f32.mrf.mxu0 }
  0xf5   : > { %v484_v59 = vadd.f32 %v1587_v48, %v483_v58 }
  0xf7   : > { %v525_v60 = vmax.f32 %v484_v59, 0.0 }
  0xf9   : > { %583 = vmatmul.f32.gmra.mxu1 %v525_v60 }
  0xfc   : > { %v486_v61 = vpop.f32.mrf.mxu0 }
  0xfd   : > { %v487_v62 = vadd.f32 %v1587_v48, %v486_v61 }
  0xff   : > { %v526_v63 = vmax.f32 %v487_v62, 0.0 }
 0x101   : > { %586 = vmatmul.f32.gmra.mxu1 %v526_v63 }
 0x104   : > { %v489_v0 = vpop.f32.mrf.mxu0 }
 0x105   : > { %v490_v1 = vadd.f32 %v1587_v48, %v489_v0 }
 0x107   : > { %v527_v2 = vmax.f32 %v490_v1, 0.0 }
 0x109   : > { %589 = vmatmul.f32.gmra.mxu1 %v527_v2 }
 0x10c   : > { %v492_v3 = vpop.f32.mrf.mxu0 }
 0x10d   : > { %v493_v4 = vadd.f32 %v1587_v48, %v492_v3 }
 0x10f   : > { %v528_v5 = vmax.f32 %v493_v4, 0.0 }
 0x111   : > { %592 = vmatmul.f32.gmra.mxu1 %v528_v5 }
 0x114   : > { %v495_v6 = vpop.f32.mrf.mxu0 }
 0x115   : > { %v496_v7 = vadd.f32 %v1587_v48, %v495_v6 }
 0x117   : > { %v529_v8 = vmax.f32 %v496_v7, 0.0 }
 0x119   : > { %595 = vmatmul.f32.gmra.mxu1 %v529_v8 }
 0x11c   : > { %v498_v9 = vpop.f32.mrf.mxu0 }
 0x11d   : > { %v499_v10 = vadd.f32 %v1587_v48, %v498_v9 }
 0x11f   : > { %v530_v11 = vmax.f32 %v499_v10, 0.0 }
 0x121   : > { %598 = vmatmul.f32.gmra.mxu1 %v530_v11 }
 0x124   : > { %v501_v13 = vpop.f32.mrf.mxu0 }
 0x125   : > { %v502_v14 = vadd.f32 %v1587_v48, %v501_v13 }
 0x127   : > { %v531_v16 = vmax.f32 %v502_v14, 0.0 }
 0x129   : > { %601 = vmatmul.f32.gmra.mxu1 %v531_v16  ;;  %v755_v16 = vld [vmem:[#allocation10 + $0x78] sm:$0xff] }
 0x12a   : > { %760 = vmatpush.msra.mxu3 %v755_v16 }
 0x12c   : > { %v504_v20 = vpop.f32.mrf.mxu0  ;;  %761 = vmatpush.msra.mxu3 %v754_v17 }
 0x12d   : > { %v505_v21 = vadd.f32 %v1587_v48, %v504_v20  ;;  %v753_v20 = vld [vmem:[#allocation10 + $0x68] sm:$0xff] }
 0x12e   : > { %762 = vmatpush.msra.mxu3 %v753_v20 }
 0x12f   : > { %v532_v23 = vmax.f32 %v505_v21, 0.0 }
 0x130   : > { %763 = vmatpush.msra.mxu3 %v752_v22 }
 0x131   : > { %604 = vmatmul.f32.gmra.mxu1 %v532_v23  ;;  %v751_v23 = vld [vmem:[#allocation10 + $0x58] sm:$0xff] }
 0x132   : > { %764 = vmatpush.msra.mxu3 %v751_v23 }
 0x134   : > { %v507_v27 = vpop.f32.mrf.mxu0  ;;  %765 = vmatpush.msra.mxu3 %v750_v24 }
 0x135   : > { %v508_v28 = vadd.f32 %v1587_v48, %v507_v27  ;;  %v749_v27 = vld [vmem:[#allocation10 + $0x48] sm:$0xff] }
 0x136   : > { %766 = vmatpush.msra.mxu3 %v749_v27 }
 0x137   : > { %v533_v30 = vmax.f32 %v508_v28, 0.0 }
 0x138   : > { %767 = vmatpush.msra.mxu3 %v748_v29 }
 0x139   : > { %607 = vmatmul.f32.gmra.mxu1 %v533_v30  ;;  %v747_v30 = vld [vmem:[#allocation10 + $0x38] sm:$0xff] }
 0x13a   : > { %768 = vmatpush.msra.mxu3 %v747_v30 }
 0x13c   : > { %v510_v34 = vpop.f32.mrf.mxu0  ;;  %769 = vmatpush.msra.mxu3 %v746_v31 }
 0x13d   : > { %v511_v35 = vadd.f32 %v1587_v48, %v510_v34 }
 0x13e   : > { %770 = vmatpush.msra.mxu3 %v745_v32 }
 0x13f   : > { %v534_v37 = vmax.f32 %v511_v35, 0.0  ;;  %v744_v35 = vld [vmem:[#allocation10 + $0x20] sm:$0xff] }
 0x140   : > { %771 = vmatpush.msra.mxu3 %v744_v35  ;;  %v1632_v35 = vld [vmem:[%s1712_s8] ss:$0 sm:$0xff] }
 0x141   : > { %610 = vmatmul.f32.gmra.mxu1 %v534_v37  ;;  %v743_v37 = vld [vmem:[#allocation10 + $0x18] sm:$0xff] }
 0x142   : > { %772 = vmatpush.msra.mxu3 %v743_v37 }
 0x144   : > { %v513_v40 = vpop.f32.mrf.mxu0  ;;  %773 = vmatpush.msra.mxu3 %v742_v38 }
 0x145   : > { %v514_v41 = vadd.f32 %v1587_v48, %v513_v40 }
 0x147   : > { %v535_v42 = vmax.f32 %v514_v41, 0.0  ;;  %v741_v41 = vld [vmem:[#allocation10 + $0x8] sm:$0xff] }
 0x148   : > { %774 = vmatpush.msra.mxu3 %v741_v41 }
 0x149   : > { %613 = vmatmul.f32.gmra.mxu1 %v535_v42 }
 0x14c   : > { %v516_v43 = vpop.f32.mrf.mxu0 }
 0x14d   : > { %v517_v44 = vadd.f32 %v1587_v48, %v516_v43  ;;  %v740_v43 = vld [vmem:[#allocation10] sm:$0xff] }
 0x14e   : > { %775 = vmatpush.msra.mxu3 %v740_v43 }
 0x14f   : > { %v536_v45 = vmax.f32 %v517_v44, 0.0 }
 0x151   : > { %616 = vmatmul.f32.gmra.mxu1 %v536_v45 }
 0x154   : > { %v519_v46 = vpop.f32.mrf.mxu0 }
 0x155   : > { %v520_v47 = vadd.f32 %v1587_v48, %v519_v46 }
 0x157   : > { %v537_v49 = vmax.f32 %v520_v47, 0.0 }
 0x159   : > { %619 = vmatmul.f32.gmra.mxu1 %v537_v49 }
 0x15e   : > { %v575_v51 = vpop.f32.mrf.mxu1 }
 0x15f   : > { %v576_v52 = vadd.f32 %v1608_v50, %v575_v51 }
 0x161   : > { %v623_v53 = vmax.f32 %v576_v52, 0.0  ;;  %v1101_v52 = vld [vmem:[%s1710_s6] ss:$0 sm:$0xff] }
 0x163   : > { %675 = vmatmul.f32.vlgmr.msra.gmra.mxu2 %v623_v53 }
 0x166   : > { %v578_v54 = vpop.f32.mrf.mxu1 }
 0x167   : > { %v579_v55 = vadd.f32 %v1608_v50, %v578_v54 }
 0x169   : > { %v624_v56 = vmax.f32 %v579_v55, 0.0 }
 0x16b   : > { %678 = vmatmul.f32.gmra.mxu2 %v624_v56 }
 0x16e   : > { %v581_v57 = vpop.f32.mrf.mxu1 }
 0x16f   : > { %v582_v48 = vadd.f32 %v1608_v50, %v581_v57 }
 0x171   : > { %v625_v58 = vmax.f32 %v582_v48, 0.0 }
 0x173   : > { %681 = vmatmul.f32.gmra.mxu2 %v625_v58 }
 0x176   : > { %v584_v59 = vpop.f32.mrf.mxu1 }
 0x177   : > { %v585_v60 = vadd.f32 %v1608_v50, %v584_v59 }
 0x179   : > { %v626_v61 = vmax.f32 %v585_v60, 0.0 }
 0x17b   : > { %684 = vmatmul.f32.gmra.mxu2 %v626_v61 }
 0x17e   : > { %v587_v62 = vpop.f32.mrf.mxu1 }
 0x17f   : > { %v588_v63 = vadd.f32 %v1608_v50, %v587_v62 }
 0x181   : > { %v627_v0 = vmax.f32 %v588_v63, 0.0 }
 0x183   : > { %687 = vmatmul.f32.gmra.mxu2 %v627_v0 }
 0x186   : > { %v590_v1 = vpop.f32.mrf.mxu1 }
 0x187   : > { %v591_v2 = vadd.f32 %v1608_v50, %v590_v1 }
 0x189   : > { %v628_v3 = vmax.f32 %v591_v2, 0.0 }
 0x18b   : > { %690 = vmatmul.f32.gmra.mxu2 %v628_v3 }
 0x18e   : > { %v593_v4 = vpop.f32.mrf.mxu1 }
 0x18f   : > { %v594_v5 = vadd.f32 %v1608_v50, %v593_v4 }
 0x191   : > { %v629_v6 = vmax.f32 %v594_v5, 0.0 }
 0x193   : > { %693 = vmatmul.f32.gmra.mxu2 %v629_v6 }
 0x196   : > { %v596_v7 = vpop.f32.mrf.mxu1 }
 0x197   : > { %v597_v8 = vadd.f32 %v1608_v50, %v596_v7 }
 0x199   : > { %v630_v9 = vmax.f32 %v597_v8, 0.0 }
 0x19b   : > { %696 = vmatmul.f32.gmra.mxu2 %v630_v9 }
 0x19e   : > { %v599_v10 = vpop.f32.mrf.mxu1 }
 0x19f   : > { %v600_v11 = vadd.f32 %v1608_v50, %v599_v10 }
 0x1a1   : > { %v631_v12 = vmax.f32 %v600_v11, 0.0 }
 0x1a3   : > { %699 = vmatmul.f32.gmra.mxu2 %v631_v12 }
 0x1a6   : > { %v602_v13 = vpop.f32.mrf.mxu1 }
 0x1a7   : > { %v603_v14 = vadd.f32 %v1608_v50, %v602_v13 }
 0x1a9   : > { %v632_v15 = vmax.f32 %v603_v14, 0.0 }
 0x1ab   : > { %702 = vmatmul.f32.gmra.mxu2 %v632_v15 }
 0x1ae   : > { %v605_v18 = vpop.f32.mrf.mxu1 }
 0x1af   : > { %v606_v19 = vadd.f32 %v1608_v50, %v605_v18 }
 0x1b1   : > { %v633_v21 = vmax.f32 %v606_v19, 0.0 }
 0x1b3   : > { %705 = vmatmul.f32.gmra.mxu2 %v633_v21 }
 0x1b6   : > { %v608_v25 = vpop.f32.mrf.mxu1 }
 0x1b7   : > { %v609_v26 = vadd.f32 %v1608_v50, %v608_v25 }
 0x1b9   : > { %v634_v28 = vmax.f32 %v609_v26, 0.0 }
 0x1bb   : > { %708 = vmatmul.f32.gmra.mxu2 %v634_v28 }
 0x1be   : > { %v611_v33 = vpop.f32.mrf.mxu1 }
 0x1bf   : > { %v612_v34 = vadd.f32 %v1608_v50, %v611_v33 }
 0x1c1   : > { %v635_v36 = vmax.f32 %v612_v34, 0.0 }
 0x1c3   : > { %711 = vmatmul.f32.gmra.mxu2 %v635_v36 }
 0x1c6   : > { %v614_v39 = vpop.f32.mrf.mxu1 }
 0x1c7   : > { %v615_v40 = vadd.f32 %v1608_v50, %v614_v39 }
 0x1c9   : > { %v636_v42 = vmax.f32 %v615_v40, 0.0 }
 0x1cb   : > { %714 = vmatmul.f32.gmra.mxu2 %v636_v42 }
 0x1ce   : > { %v617_v44 = vpop.f32.mrf.mxu1 }
 0x1cf   : > { %v618_v45 = vadd.f32 %v1608_v50, %v617_v44 }
 0x1d1   : > { %v637_v46 = vmax.f32 %v618_v45, 0.0 }
 0x1d3   : > { %717 = vmatmul.f32.gmra.mxu2 %v637_v46 }
 0x1d6   : > { %v620_v47 = vpop.f32.mrf.mxu1 }
 0x1d7   : > { %v621_v49 = vadd.f32 %v1608_v50, %v620_v47 }
 0x1d9   : > { %v638_v51 = vmax.f32 %v621_v49, 0.0 }
 0x1db   : > { %720 = vmatmul.f32.gmra.mxu2 %v638_v51 }
 0x1e6   : > { %v676_v53 = vpop.f32.mrf.mxu2 }
 0x1e7   : > { %v677_v54 = vadd.f32 %v1101_v52, %v676_v53 }
 0x1e9   : > { %v724_v55 = vmax.f32 %v677_v54, 0.0 }
 0x1eb   : > { %776 = vmatmul.f32.vlgmr.msra.gmra.mxu3 %v724_v55 }
 0x1ee   : > { %v679_v56 = vpop.f32.mrf.mxu2 }
 0x1ef   : > { %v680_v57 = vadd.f32 %v1101_v52, %v679_v56 }
 0x1f1   : > { %v725_v48 = vmax.f32 %v680_v57, 0.0 }
 0x1f3   : > { %779 = vmatmul.f32.gmra.mxu3 %v725_v48 }
 0x1f6   : > { %v682_v58 = vpop.f32.mrf.mxu2 }
 0x1f7   : > { %v683_v59 = vadd.f32 %v1101_v52, %v682_v58 }
 0x1f9   : > { %v726_v60 = vmax.f32 %v683_v59, 0.0 }
 0x1fb   : > { %782 = vmatmul.f32.gmra.mxu3 %v726_v60 }
 0x1fe   : > { %v685_v61 = vpop.f32.mrf.mxu2 }
 0x1ff   : > { %v686_v50 = vadd.f32 %v1101_v52, %v685_v61 }
 0x201   : > { %v727_v62 = vmax.f32 %v686_v50, 0.0 }
 0x203   : > { %785 = vmatmul.f32.gmra.mxu3 %v727_v62 }
 0x206   : > { %v688_v63 = vpop.f32.mrf.mxu2 }
 0x207   : > { %v689_v0 = vadd.f32 %v1101_v52, %v688_v63 }
 0x209   : > { %v728_v1 = vmax.f32 %v689_v0, 0.0 }
 0x20b   : > { %788 = vmatmul.f32.gmra.mxu3 %v728_v1 }
 0x20e   : > { %v691_v2 = vpop.f32.mrf.mxu2 }
 0x20f   : > { %v692_v3 = vadd.f32 %v1101_v52, %v691_v2 }
 0x211   : > { %v729_v4 = vmax.f32 %v692_v3, 0.0 }
 0x213   : > { %791 = vmatmul.f32.gmra.mxu3 %v729_v4 }
 0x216   : > { %v694_v5 = vpop.f32.mrf.mxu2 }
 0x217   : > { %v695_v6 = vadd.f32 %v1101_v52, %v694_v5 }
 0x219   : > { %v730_v7 = vmax.f32 %v695_v6, 0.0 }
 0x21b   : > { %794 = vmatmul.f32.gmra.mxu3 %v730_v7 }
 0x21e   : > { %v697_v8 = vpop.f32.mrf.mxu2 }
 0x21f   : > { %v698_v9 = vadd.f32 %v1101_v52, %v697_v8 }
 0x221   : > { %v731_v10 = vmax.f32 %v698_v9, 0.0 }
 0x223   : > { %797 = vmatmul.f32.gmra.mxu3 %v731_v10 }
 0x226   : > { %v700_v11 = vpop.f32.mrf.mxu2 }
 0x227   : > { %v701_v12 = vadd.f32 %v1101_v52, %v700_v11 }
 0x229   : > { %v732_v13 = vmax.f32 %v701_v12, 0.0 }
 0x22b   : > { %800 = vmatmul.f32.gmra.mxu3 %v732_v13 }
 0x22e   : > { %v703_v14 = vpop.f32.mrf.mxu2 }
 0x22f   : > { %v704_v15 = vadd.f32 %v1101_v52, %v703_v14 }
 0x231   : > { %v733_v16 = vmax.f32 %v704_v15, 0.0 }
 0x233   : > { %803 = vmatmul.f32.gmra.mxu3 %v733_v16 }
 0x236   : > { %v706_v17 = vpop.f32.mrf.mxu2 }
 0x237   : > { %v707_v18 = vadd.f32 %v1101_v52, %v706_v17 }
 0x239   : > { %v734_v19 = vmax.f32 %v707_v18, 0.0 }
 0x23b   : > { %806 = vmatmul.f32.gmra.mxu3 %v734_v19 }
 0x23e   : > { %v709_v20 = vpop.f32.mrf.mxu2 }
 0x23f   : > { %v710_v21 = vadd.f32 %v1101_v52, %v709_v20 }
 0x241   : > { %v735_v22 = vmax.f32 %v710_v21, 0.0 }
 0x243   : > { %809 = vmatmul.f32.gmra.mxu3 %v735_v22 }
 0x246   : > { %v712_v23 = vpop.f32.mrf.mxu2 }
 0x247   : > { %v713_v24 = vadd.f32 %v1101_v52, %v712_v23 }
 0x249   : > { %v736_v25 = vmax.f32 %v713_v24, 0.0 }
 0x24b   : > { %812 = vmatmul.f32.gmra.mxu3 %v736_v25 }
 0x24e   : > { %v715_v26 = vpop.f32.mrf.mxu2 }
 0x24f   : > { %v716_v27 = vadd.f32 %v1101_v52, %v715_v26 }
 0x251   : > { %v737_v28 = vmax.f32 %v716_v27, 0.0 }
 0x253   : > { %815 = vmatmul.f32.gmra.mxu3 %v737_v28 }
 0x256   : > { %v718_v29 = vpop.f32.mrf.mxu2 }
 0x257   : > { %v719_v30 = vadd.f32 %v1101_v52, %v718_v29 }
 0x259   : > { %v738_v31 = vmax.f32 %v719_v30, 0.0 }
 0x25b   : > { %818 = vmatmul.f32.gmra.mxu3 %v738_v31 }
 0x25e   : > { %v721_v32 = vpop.f32.mrf.mxu2 }
 0x25f   : > { %v722_v33 = vadd.f32 %v1101_v52, %v721_v32 }
 0x261   : > { %v739_v34 = vmax.f32 %v722_v33, 0.0 }
 0x263   : > { %821 = vmatmul.f32.gmra.mxu3 %v739_v34 }
 0x26e   : > { %v777_v36 = vpop.f32.mrf.mxu3 }
 0x26f   : > { %v778_v37 = vadd.f32 %v1632_v35, %v777_v36 }
 0x271   : > { %1103 = vtanh.f32 %v778_v37 }
 0x276   : > { %v780_v38 = vpop.f32.mrf.mxu3 }
 0x277   : > { %v1104_v39 = vpop.eup %1103  ;;  %v781_v40 = vadd.f32 %v1632_v35, %v780_v38 }
 0x278   : > { %841 = vst [vmem:[%s1638_s17] sm:$0xff] %v1104_v39 }
 0x279   : > { %1105 = vtanh.f32 %v781_v40 }
 0x27e   : > { %v783_v41 = vpop.f32.mrf.mxu3 }
 0x27f   : > { %v1106_v42 = vpop.eup %1105  ;;  %v784_v43 = vadd.f32 %v1632_v35, %v783_v41 }
 0x280   : > { %842 = vst [vmem:[%s1638_s17 + $0x8] sm:$0xff] %v1106_v42 }
 0x281   : > { %1107 = vtanh.f32 %v784_v43 }
 0x286   : > { %v786_v44 = vpop.f32.mrf.mxu3 }
 0x287   : > { %v1108_v45 = vpop.eup %1107  ;;  %v787_v46 = vadd.f32 %v1632_v35, %v786_v44 }
 0x288   : > { %843 = vst [vmem:[%s1638_s17 + $0x10] sm:$0xff] %v1108_v45 }
 0x289   : > { %1109 = vtanh.f32 %v787_v46 }
 0x28e   : > { %v789_v47 = vpop.f32.mrf.mxu3 }
 0x28f   : > { %v1110_v49 = vpop.eup %1109  ;;  %v790_v51 = vadd.f32 %v1632_v35, %v789_v47 }
 0x290   : > { %844 = vst [vmem:[%s1638_s17 + $0x18] sm:$0xff] %v1110_v49 }
 0x291   : > { %1111 = vtanh.f32 %v790_v51 }
 0x296   : > { %v792_v52 = vpop.f32.mrf.mxu3 }
 0x297   : > { %v1112_v53 = vpop.eup %1111  ;;  %v793_v54 = vadd.f32 %v1632_v35, %v792_v52 }
 0x298   : > { %845 = vst [vmem:[%s1638_s17 + $0x20] sm:$0xff] %v1112_v53 }
 0x299   : > { %1113 = vtanh.f32 %v793_v54 }
 0x29e   : > { %v795_v55 = vpop.f32.mrf.mxu3 }
 0x29f   : > { %v1114_v56 = vpop.eup %1113  ;;  %v796_v57 = vadd.f32 %v1632_v35, %v795_v55 }
 0x2a0   : > { %846 = vst [vmem:[%s1638_s17 + $0x28] sm:$0xff] %v1114_v56 }
 0x2a1   : > { %1115 = vtanh.f32 %v796_v57 }
 0x2a6   : > { %v798_v48 = vpop.f32.mrf.mxu3 }
 0x2a7   : > { %v1116_v58 = vpop.eup %1115  ;;  %v799_v59 = vadd.f32 %v1632_v35, %v798_v48 }
 0x2a8   : > { %847 = vst [vmem:[%s1638_s17 + $0x30] sm:$0xff] %v1116_v58 }
 0x2a9   : > { %1117 = vtanh.f32 %v799_v59 }
 0x2ae   : > { %v801_v60 = vpop.f32.mrf.mxu3 }
 0x2af   : > { %v1118_v61 = vpop.eup %1117  ;;  %v802_v50 = vadd.f32 %v1632_v35, %v801_v60 }
 0x2b0   : > { %848 = vst [vmem:[%s1638_s17 + $0x38] sm:$0xff] %v1118_v61 }
 0x2b1   : > { %1119 = vtanh.f32 %v802_v50 }
 0x2b6   : > { %v804_v62 = vpop.f32.mrf.mxu3 }
 0x2b7   : > { %v1120_v63 = vpop.eup %1119  ;;  %v805_v0 = vadd.f32 %v1632_v35, %v804_v62 }
 0x2b8   : > { %849 = vst [vmem:[%s1638_s17 + $0x40] sm:$0xff] %v1120_v63 }
 0x2b9   : > { %1121 = vtanh.f32 %v805_v0 }
 0x2be   : > { %v807_v1 = vpop.f32.mrf.mxu3 }
 0x2bf   : > { %v1122_v2 = vpop.eup %1121  ;;  %v808_v3 = vadd.f32 %v1632_v35, %v807_v1 }
 0x2c0   : > { %850 = vst [vmem:[%s1638_s17 + $0x48] sm:$0xff] %v1122_v2 }
 0x2c1   : > { %1123 = vtanh.f32 %v808_v3 }
 0x2c6   : > { %v810_v4 = vpop.f32.mrf.mxu3 }
 0x2c7   : > { %v1124_v5 = vpop.eup %1123  ;;  %v811_v6 = vadd.f32 %v1632_v35, %v810_v4 }
 0x2c8   : > { %851 = vst [vmem:[%s1638_s17 + $0x50] sm:$0xff] %v1124_v5 }
 0x2c9   : > { %1125 = vtanh.f32 %v811_v6 }
 0x2ce   : > { %v813_v7 = vpop.f32.mrf.mxu3 }
 0x2cf   : > { %v1126_v8 = vpop.eup %1125  ;;  %v814_v9 = vadd.f32 %v1632_v35, %v813_v7 }
 0x2d0   : > { %852 = vst [vmem:[%s1638_s17 + $0x58] sm:$0xff] %v1126_v8 }
 0x2d1   : > { %1127 = vtanh.f32 %v814_v9 }
 0x2d6   : > { %v816_v10 = vpop.f32.mrf.mxu3 }
 0x2d7   : > { %v1128_v11 = vpop.eup %1127  ;;  %v817_v12 = vadd.f32 %v1632_v35, %v816_v10 }
 0x2d8   : > { %853 = vst [vmem:[%s1638_s17 + $0x60] sm:$0xff] %v1128_v11 }
 0x2d9   : > { %1129 = vtanh.f32 %v817_v12 }
 0x2de   : > { %v819_v13 = vpop.f32.mrf.mxu3 }
 0x2df   : > { %v1130_v14 = vpop.eup %1129  ;;  %v820_v15 = vadd.f32 %v1632_v35, %v819_v13 }
 0x2e0   : > { %854 = vst [vmem:[%s1638_s17 + $0x68] sm:$0xff] %v1130_v14 }
 0x2e1   : > { %1131 = vtanh.f32 %v820_v15 }
 0x2e6   : > { %v822_v16 = vpop.f32.mrf.mxu3 }
 0x2e7   : > { %v1132_v17 = vpop.eup %1131  ;;  %v823_v18 = vadd.f32 %v1632_v35, %v822_v16 }
 0x2e8   : > { %855 = vst [vmem:[%s1638_s17 + $0x70] sm:$0xff] %v1132_v17 }
 0x2e9   : > { %1133 = vtanh.f32 %v823_v18 }
 0x2ef   : > { %v1134_v19 = vpop.eup %1133 }
 0x2f0   : > { %856 = vst [vmem:[%s1638_s17 + $0x78] sm:$0xff] %v1134_v19 }
 0x2f1   : > { %1312 = shalt.err (!%p1309_p10)
}
 0x2f2   : > { %s1367_s24 = smov 128   ;;  %s1368_s17 = smov 8  }
 0x2f3   : > { %1026 = dma.vmem_to_hbm [thread:$0]  (%p1515_p3), %s871_s25, 2048, %s873_s1, %s858_s15, %s1367_s24, %s1367_s24, %s1368_s17  }
 0x2f4 PF: > { %s887_s23 = sand.u32 1, %s1347_s30   ;;  %p1730_p12 = scmp.ge.s32.totalorder %s1359_s12, 2 }
 0x2f5   : > { %s888_s26 = scalar_lea.sflag [#allocation4], %s887_s23 }
 0x2f6   : > { %p1046_p13 = pnand %p1730_p12, %p1454_p6 }
 0x2f8   : > { %p1047_p0 = pneg %p1046_p13 }
 0x2fa   : > { %1342 = dma.done.wait (%p1047_p0), %s888_s26, 2048  }
 0x2fb   : > { %1344 = vsyncadd (%p1047_p0), %s888_s26, 4294965248  ;;  %p24_p5 = scmp.ge.s32.totalorder %s1505_s14, 4   ;;  %s1731_s30 = smov %s1351_s10 }
 0x2fc   : > { %s1732_s10 = smov %s1355_s11  ;;  %s1733_s11 = smov %s1521_s22 }
 0x2fd   : > { %s1734_s12 = smov %s1505_s14  ;;  %26 = sbr.rel (!%p24_p5) target bundleno = 11 (0xb), region = 117 }
 0x302   :  { %894 = vsyncpa [#allocation3], 1 }
 0x303   :  { %896 = vsyncpa [#allocation3 + $0x1], 1 }
 0x304   :  { %897 = vsyncpa [#allocation6], 1 }
 0x305   :  { %898 = vsyncpa [#allocation9], 1 }
 0x306   :  { %899 = vsyncpa [#allocation4], 1 }
 0x307   :  { %901 = vsyncpa [#allocation4 + $0x1], 1 }

</bundles_post_ra>
